<compile_context>
chip_gen: v7x
topology: tpu7x:2x2x1
jax: 0.10.0
libtpu: 0.0.40
codegen_flags: <defaults>
</compile_context>

<pallas_src>
import functools

import jax
import jax.numpy as jnp
from jax.experimental import pallas as pl
from jax.experimental.pallas import tpu as pltpu

_LANE = 128
_EPS = 1e-5
_MIB = 1 << 20


def _entropy_partial_kernel(x_ref, o_ref, *, block_rows, fold, rows_valid,
                            need_mask):
    """One grid step: entropy of a lane-dense tile -> (fold, 128) partial sum."""
    x = x_ref[...].astype(jnp.float32)              # DMA stays in input dtype
    ent = -x * jnp.log(x + jnp.float32(_EPS))       # VPU + EUP
    if need_mask:
        # Last grid block may extend past the array: exclude stale rows.
        # (select, not multiply, so garbage/NaN in dead rows cannot leak.)
        row0 = pl.program_id(0) * block_rows
        rid = row0 + jax.lax.broadcasted_iota(jnp.int32, (block_rows, 1), 0)
        ent = jnp.where(rid < rows_valid, ent, 0.0)
    # Fold block rows into a (fold, 128) partial: fold=64 gives 8 independent
    # vreg accumulation chains (pure VPU adds, no XLU / scalar round-trip).
    o_ref[...] = jnp.sum(ent.reshape(-1, fold, _LANE), axis=0)


def entropy_loss(x, coeff=1.0, block_rows=None):
    """Pallas implementation of EntropyLoss with reduction='mean'.

    Args:
      x: array with the class axis at dim 1 (any rank >= 2), e.g. (N, C).
      coeff: scalar multiplier.
      block_rows: optional override for rows (of 128 lanes) per grid step.
    Returns:
      float32 scalar loss.
    """
    # TODO(synk): reduction='none' (per-sample entropy vector) is not fused here.
    if x.ndim < 2:
        raise ValueError("EntropyLoss expects the class axis at dim 1 (rank >= 2).")

    # Denominator of the mean = product of all non-class dims (= numel / C).
    n_rows = x.size // x.shape[1]
    itemsize = jnp.dtype(x.dtype).itemsize
    sub_mult = max(8, 32 // itemsize)               # sublane tile for the dtype

    def _jnp_ent_sum(v):
        v = v.astype(jnp.float32)
        return jnp.sum(-v * jnp.log(v + jnp.float32(_EPS)))

    # Lane-dense flattening: valid because the loss sums over every element,
    # and a contiguous reshape is a bitcast (no HBM traffic).
    xf = x.reshape(-1)
    total = xf.size
    rows_full = total // _LANE
    rem = total - rows_full * _LANE

    if rows_full == 0:
        # Tiny input: not worth a kernel launch.
        return jnp.float32(coeff) * _jnp_ent_sum(xf) / jnp.float32(n_rows)

    tail_sum = jnp.float32(0.0)
    if rem:
        # <128-element ragged tail handled in plain JAX (no jnp.pad anywhere).
        tail_sum = _jnp_ent_sum(xf[rows_full * _LANE:])
        xf = xf[: rows_full * _LANE]
    x2 = xf.reshape(rows_full, _LANE)

    # --- Chip-aware tile sizing -------------------------------------------
    try:
        vmem_cap = int(pltpu.get_tpu_info().vmem_capacity_bytes)
    except Exception:
        vmem_cap = 64 * _MIB                        # conservative fallback
    # Target block size measured in f32-equivalent bytes (the compute temp
    # footprint): 16 MiB on 128 MiB-VMEM chips, 8 MiB on 64 MiB-VMEM chips.
    f32_block_target = 16 * _MIB if vmem_cap >= 96 * _MIB else 8 * _MIB

    if block_rows is None:
        block_rows = f32_block_target // (_LANE * 4)
    rows_cap = -(-rows_full // sub_mult) * sub_mult  # smallest legal cover
    block_rows = min(block_rows, rows_cap)
    if block_rows >= 64:
        block_rows = (block_rows // 64) * 64         # keep fold=64 divisor
    else:
        block_rows = -(-block_rows // sub_mult) * sub_mult
    block_rows = max(block_rows, sub_mult)
    fold = 64 if block_rows >= 64 else block_rows

    grid = -(-rows_full // block_rows)
    need_mask = (rows_full % block_rows) != 0

    in_block_bytes = block_rows * _LANE * itemsize
    f32_block_bytes = block_rows * _LANE * 4
    # 2x double-buffered input + f32 elementwise temporaries + headroom.
    vmem_limit = 2 * in_block_bytes + 4 * f32_block_bytes + 4 * _MIB
    vmem_limit = int(min(max(vmem_limit, 32 * _MIB), vmem_cap - 4 * _MIB))

    main_elems = rows_full * _LANE
    cost = pl.CostEstimate(
        flops=3 * main_elems,
        transcendentals=main_elems,
        bytes_accessed=main_elems * itemsize + grid * fold * _LANE * 4,
    )

    kernel = functools.partial(
        _entropy_partial_kernel,
        block_rows=block_rows, fold=fold, rows_valid=rows_full,
        need_mask=need_mask,
    )

    partials = pl.pallas_call(
        kernel,
        out_shape=jax.ShapeDtypeStruct((grid * fold, _LANE), jnp.float32),
        grid_spec=pltpu.PrefetchScalarGridSpec(
            num_scalar_prefetch=0,
            grid=(grid,),
            in_specs=[pl.BlockSpec((block_rows, _LANE), lambda i: (i, 0))],
            out_specs=pl.BlockSpec((fold, _LANE), lambda i: (i, 0)),
        ),
        compiler_params=pltpu.CompilerParams(
            dimension_semantics=("parallel",),   # independent partials -> megacore OK
            vmem_limit_bytes=vmem_limit,
        ),
        cost_estimate=cost,
    )(x2)

    # Tiny finalize in JAX: tree-reduce partials + tail, scale by coeff / mean.
    return jnp.float32(coeff) * (jnp.sum(partials) + tail_sum) / jnp.float32(n_rows)


if __name__ == "__main__":
    key = jax.random.PRNGKey(0)
    k0, k1, k2, k3 = jax.random.split(key, 4)

    def ref_loss(p, coeff):
        return coeff * jnp.mean(jnp.sum(-p * jnp.log(p + _EPS), axis=1))

    # 1) (N, C) softmax probabilities, the CDAN use case (total % 128 == 0).
    probs = jax.nn.softmax(jax.random.normal(k0, (8, 32), jnp.float32), axis=-1)
    out = jax.block_until_ready(entropy_loss(probs, coeff=1.0))
    ref = ref_loss(probs, 1.0)
    assert jnp.allclose(out, ref, rtol=1e-5, atol=1e-5), (out, ref)

    # 2) Higher-rank input (class axis = dim 1); tiny -> pure-JAX fallback path.
    p3 = jax.nn.softmax(jax.random.normal(k1, (3, 5, 4), jnp.float32), axis=1)
    out3 = jax.block_until_ready(entropy_loss(p3, coeff=0.5))
    ref3 = 0.5 * jnp.mean(jnp.sum(-p3 * jnp.log(p3 + _EPS), axis=1))
    assert jnp.allclose(out3, ref3, rtol=1e-5, atol=1e-5), (out3, ref3)

    # 3) Exercises the in-kernel ragged-row mask (rows_full % block_rows != 0).
    p4 = jax.nn.softmax(jax.random.normal(k2, (9, 128), jnp.float32), axis=-1)
    out4 = jax.block_until_ready(entropy_loss(p4, coeff=2.0))
    ref4 = ref_loss(p4, 2.0)
    assert jnp.allclose(out4, ref4, rtol=1e-5, atol=1e-5), (out4, ref4)

    # 4) Exercises the <128-element wrapper tail (no jnp.pad anywhere).
    p5 = jax.nn.softmax(jax.random.normal(k3, (10, 100), jnp.float32), axis=-1)
    out5 = jax.block_until_ready(entropy_loss(p5, coeff=1.0))
    ref5 = ref_loss(p5, 1.0)
    assert jnp.allclose(out5, ref5, rtol=1e-5, atol=1e-5), (out5, ref5)

    print("KERNEL_OK")
</pallas_src>

<mosaic_0001>
module attributes {stable_mosaic.version = 11 : i64} {
  func.func @_entropy_partial_kernel(%arg0: i32, %arg1: memref<8x128xf32, #tpu.memory_space<vmem>>, %arg2: memref<8x128xf32, #tpu.memory_space<vmem>>) attributes {dimension_semantics = [#tpu.dimension_semantics<parallel>], iteration_bounds = array<i64: 1>, scalar_prefetch = 0 : i64, scratch_operands = 0 : i64, tpu.core_type = #tpu.core_type<tc>, window_params = [{transform_indices = @transform_0, window_bounds = array<i64: 8, 128>}, {transform_indices = @transform_1, window_bounds = array<i64: 8, 128>}]} {
    %c0 = arith.constant 0 : index
    %c0_0 = arith.constant 0 : index
    %0 = vector.load %arg1[%c0, %c0_0] : memref<8x128xf32, #tpu.memory_space<vmem>>, vector<8x128xf32>
    %cst = arith.constant 0.000000e+00 : f32
    %1 = vector.broadcast %cst : f32 to vector<8x128xf32>
    %2 = arith.subf %1, %0 : vector<8x128xf32>
    %cst_1 = arith.constant 9.99999974E-6 : f32
    %3 = vector.broadcast %cst_1 : f32 to vector<8x128xf32>
    %4 = arith.addf %0, %3 : vector<8x128xf32>
    %5 = math.log %4 : vector<8x128xf32>
    %6 = arith.mulf %2, %5 : vector<8x128xf32>
    %c8_i32 = arith.constant 8 : i32
    %7 = arith.muli %arg0, %c8_i32 : i32
    %8 = tpu.iota {dimensions = array<i32: 0>} : vector<8x1xi32>
    %9 = vector.broadcast %7 : i32 to vector<8x1xi32>
    %10 = arith.addi %9, %8 : vector<8x1xi32>
    %c2_i32 = arith.constant 2 : i32
    %11 = vector.broadcast %c2_i32 : i32 to vector<8x1xi32>
    %12 = arith.cmpi slt, %10, %11 : vector<8x1xi32>
    %cst_2 = arith.constant 0.000000e+00 : f32
    %13 = vector.shape_cast %12 : vector<8x1xi1> to vector<8x1xi1>
    %14 = vector.broadcast %13 : vector<8x1xi1> to vector<8x128xi1>
    %15 = vector.broadcast %cst_2 : f32 to vector<8x128xf32>
    %16 = arith.select %14, %6, %15 : vector<8x128xi1>, vector<8x128xf32>
    %17 = vector.shape_cast %16 : vector<8x128xf32> to vector<1x8x128xf32>
    %cst_3 = arith.constant dense<0.000000e+00> : vector<8x128xf32>
    %18 = vector.multi_reduction <add>, %17, %cst_3 [0] : vector<1x8x128xf32> to vector<8x128xf32>
    %c0_4 = arith.constant 0 : index
    %c0_5 = arith.constant 0 : index
    %19 = vector.load %arg2[%c0_4, %c0_5] : memref<8x128xf32, #tpu.memory_space<vmem>>, vector<8x128xf32>
    tpu.vector_store %arg2[%c0_4, %c0_5], %18 {strides = array<i32>} : memref<8x128xf32, #tpu.memory_space<vmem>>, vector<8x128xf32>,
    return
  }
  func.func @transform_0(%arg0: i32) -> (i32, i32) {
    %c0_i32 = arith.constant 0 : i32
    %c0_i32_0 = arith.constant 0 : i32
    return %arg0, %c0_i32 : i32, i32
  }
  func.func @transform_1(%arg0: i32) -> (i32, i32) {
    %c0_i32 = arith.constant 0 : i32
    %c0_i32_0 = arith.constant 0 : i32
    return %arg0, %c0_i32 : i32, i32
  }
}

</mosaic_0001>

<bundles_post_ra>
// kernel: tpu_custom_call.1
= control target key start
LH: loop header
LB: loop body
LE: loop exit
PB: predicated region body
PF: predicated region fallthrough
CT: control target
= control target key end

     0   :  { %6 = vsyncpa [#allocation3], 0  ;;  %s147_s0 = inlined_call_operand.hbm [shape: f32[2,128], index: 0, kind: input, shape index: {}]   ;;  %s148_s1 = inlined_call_operand.hbm [shape: f32[8,128], index: 1, kind: output, shape index: {}]  }
   0x1   :  { %7 = vsyncpa [#allocation4], 0 }
   0x2   :  { %12 = vsyncadd [#allocation3], 96  ;;  %s109_s6 = smov [#allocation2]   ;;  %s61_s10 = scalar_lea.hbm %s147_s0, 32 }
   0x3   :  { %s13_s7 = sshll.u32 %s109_s6, 4  ;;  %p62_p0 = scmp.ne.s32.totalorder %s147_s0, %s61_s10  ;;  %s14_s7 = int_to_ptr.vmem [resolvable:$true] %s13_s7 }
   0x4   :  { %p65_p1 = scmp.lt.u32.totalorder %s61_s10, %s147_s0 }
   0x6   :  { %p67_p2 = pnand %p65_p1, %p62_p0 }
   0x8   :  { %70 = shalt.err (!%p67_p2)
}
   0x9   :  { %s71_s15 = scalar_lea.vmem %s14_s7, 32  ;;  %s75_s16 = scalar_lea.vmem %s14_s7, 128 }
   0xa   :  { %p72_p3 = scmp.ne.s32.totalorder %s14_s7, %s71_s15  ;;  %p76_p4 = scmp.lt.s32.totalorder %s14_s7, %s14_s7 }
   0xb   :  { %p77_p5 = scmp.lt.s32.totalorder %s75_s16, %s71_s15 }
   0xd   :  { %p78_p6 = por %p77_p5, %p76_p4 }
   0xf   :  { %p79_p7 = pnand %p78_p6, %p72_p3 }
  0x11   :  { %82 = shalt.err (!%p79_p7)
}
  0x12   :  { %s110_s17 = smov 32   ;;  %s111_s18 = smov 2  }
  0x13   :  { %19 = dma.hbm_to_vmem [thread:$0]  %s147_s0, 32, %s14_s7, [#allocation3], %s110_s17, %s110_s17, %s111_s18  }
  0x14   :  { %105 = dma.done.wait [#allocation3], 128  }
  0x15   :  { %106 = vsyncadd [#allocation3], 4294967168  ;;  %v23_v0 = vld [vmem:[#allocation2] sm:$0xff]  ;;  %v30_v2 = vlaneseq  ;;  %s112_s21 = smov [#allocation5]  }
  0x16   :  { %v25_v1 = vadd.f32 1e-05, %v23_v0  ;;  %v24_v4 = vsub.f32 0.0, %v23_v0  ;;  %s46_s22 = sshll.u32 %s112_s21, 4  ;;  %s47_s22 = int_to_ptr.vmem [resolvable:$true] %s46_s22 }
  0x17   :  { %v31_v3 = vshrl.u32 %v30_v2, 7  ;;  %s83_s23 = scalar_lea.vmem %s47_s22, 128  ;;  %p88_p9 = scmp.lt.s32.totalorder %s47_s22, %s47_s22 }
  0x18   :  { %59 = vlog2.f32 %v25_v1  ;;  %p84_p8 = scmp.ne.s32.totalorder %s47_s22, %s83_s23  ;;  %p89_p10 = scmp.lt.s32.totalorder %s83_s23, %s83_s23 }
  0x19   :  { %vm34_vm0 = vcmp.lt.s32.totalorder %v31_v3, 2 }
  0x1a   :  { %p90_p11 = por %p89_p10, %p88_p9 }
  0x1c   :  { %p91_p12 = pnand %p90_p11, %p84_p8 }
  0x22   :  { %v60_v5 = vpop.eup %59 }
  0x23   :  { %v27_v6 = vmul.f32 0.6931472, %v60_v5 }
  0x25   :  { %v28_v7 = vmul.f32 %v27_v6, %v24_v4 }
  0x27   :  { %v37_v8 = vsel %vm34_vm0, %v28_v7, 0.0 }
  0x28   :  { %39 = vst [vmem:[#allocation5] sm:$0xff] %v37_v8 }
  0x29   :  { %94 = shalt.err (!%p91_p12)
}
  0x2a   :  { %s95_s25 = scalar_lea.hbm %s148_s1, 128 }
  0x2b   :  { %p96_p13 = scmp.ne.s32.totalorder %s148_s1, %s95_s25  ;;  %p99_p0 = scmp.lt.u32.totalorder %s95_s25, %s148_s1 }
  0x2d   :  { %p101_p1 = pnand %p99_p0, %p96_p13 }
  0x2f   :  { %104 = shalt.err (!%p101_p1)
}
  0x30   :  { %49 = dma.vmem_to_hbm [thread:$0]  %s47_s22, 128, %s148_s1, [#allocation4]  }
  0x31   :  { %107 = dma.done.wait [#allocation4], 128  }
  0x32   :  { %108 = vsyncadd [#allocation4], 4294967168 }
  0x33   :  { %53 = vsyncpa [#allocation3], 1 }
  0x34   :  { %54 = vsyncpa [#allocation4], 1 }

</bundles_post_ra>
